<compile_context>
chip_gen: v7x
topology: tpu7x:2x2x1
jax: 0.10.0
libtpu: 0.0.40
codegen_flags: <defaults>
</compile_context>

<pallas_src>
import jax
import jax.numpy as jnp
from jax.experimental import pallas as pl
from jax.experimental.pallas import tpu as pltpu


def _round_up(n, m):
    return ((n + m - 1) // m) * m


# ----------------- encoder: h = relu(x @ W1 + b1), K-tiled reduction -----------------
def _encoder_kernel(x_ref, w1_ref, b1_ref, h_ref, acc_ref):
    k = pl.program_id(1)

    @pl.when(k == 0)
    def _():
        acc_ref[...] = jnp.zeros_like(acc_ref)

    acc_ref[...] += jnp.dot(x_ref[...], w1_ref[...],
                            preferred_element_type=jnp.float32)

    @pl.when(k == pl.num_programs(1) - 1)
    def _():
        h = jnp.maximum(acc_ref[...] + b1_ref[...], 0.0)
        h_ref[...] = h.astype(h_ref.dtype)


# ----------------- decoder: y = sigmoid(h @ W2 + b2), N-tiled -----------------
def _decoder_kernel(h_ref, w2_ref, b2_ref, o_ref):
    y = jnp.dot(h_ref[...], w2_ref[...],
                preferred_element_type=jnp.float32) + b2_ref[...]
    o_ref[...] = jax.nn.sigmoid(y).astype(o_ref.dtype)


def autoencoder(x, w1, b1, w2, b2, *, tile_b=128, tile_k=512, tile_n=512):
    """y = sigmoid(relu(x @ w1 + b1) @ w2 + b2); w1:(Din,C), w2:(C,Din)."""
    B, Din = x.shape
    C = w1.shape[1]
    out_dtype = x.dtype

    # Pad everything to MXU/lane-friendly multiples (zero padding => exact math).
    Bp = _round_up(B, tile_b)
    Kp = _round_up(Din, tile_k)      # encoder contraction dim
    Np = _round_up(Din, tile_n)      # decoder output dim
    Cp = _round_up(C, 128)           # code dim -> full 128-lane vregs

    # bf16 operands for the MXU; f32 biases & accumulation.
    xp = jnp.zeros((Bp, Kp), jnp.bfloat16).at[:B, :Din].set(x.astype(jnp.bfloat16))
    w1p = jnp.zeros((Kp, Cp), jnp.bfloat16).at[:Din, :C].set(w1.astype(jnp.bfloat16))
    b1p = jnp.zeros((1, Cp), jnp.float32).at[:, :C].set(
        b1.astype(jnp.float32).reshape(1, C))
    w2p = jnp.zeros((Cp, Np), jnp.bfloat16).at[:C, :Din].set(w2.astype(jnp.bfloat16))
    b2p = jnp.zeros((1, Np), jnp.float32).at[:, :Din].set(
        b2.astype(jnp.float32).reshape(1, Din))

    n_b = Bp // tile_b
    n_k = Kp // tile_k
    n_n = Np // tile_n

    # ---------------- encoder pallas_call: grid (batch, K), K last ----------------
    enc_cost = pl.CostEstimate(
        flops=2 * Bp * Kp * Cp,
        transcendentals=0,
        bytes_accessed=xp.size * 2 + w1p.size * 2 * n_b + Bp * Cp * 2,
    )
    h = pl.pallas_call(
        _encoder_kernel,
        out_shape=jax.ShapeDtypeStruct((Bp, Cp), jnp.bfloat16),
        grid_spec=pltpu.PrefetchScalarGridSpec(
            num_scalar_prefetch=0,
            grid=(n_b, n_k),
            in_specs=[
                pl.BlockSpec((tile_b, tile_k), lambda i, k: (i, k)),   # x tile
                pl.BlockSpec((tile_k, Cp), lambda i, k: (k, 0)),       # W1 K-chunk
                pl.BlockSpec((1, Cp), lambda i, k: (0, 0)),            # b1 (constant)
            ],
            out_specs=pl.BlockSpec((tile_b, Cp), lambda i, k: (i, 0)),
            scratch_shapes=[pltpu.VMEM((tile_b, Cp), jnp.float32)],    # f32 accumulator
        ),
        compiler_params=pltpu.CompilerParams(
            dimension_semantics=("parallel", "arbitrary"),
            vmem_limit_bytes=64 * 1024 * 1024,
        ),
        cost_estimate=enc_cost,
    )(xp, w1p, b1p)

    # --------- decoder pallas_call: grid (N-chunks, batch), batch fastest so each
    # W2 column block is streamed from HBM exactly once and reused across batch ---------
    dec_cost = pl.CostEstimate(
        flops=2 * Bp * Cp * Np,
        transcendentals=Bp * Np,
        bytes_accessed=w2p.size * 2 + Bp * Cp * 2 * n_n + Bp * Np * out_dtype.itemsize,
    )
    yp = pl.pallas_call(
        _decoder_kernel,
        out_shape=jax.ShapeDtypeStruct((Bp, Np), out_dtype),
        grid_spec=pltpu.PrefetchScalarGridSpec(
            num_scalar_prefetch=0,
            grid=(n_n, n_b),
            in_specs=[
                pl.BlockSpec((tile_b, Cp), lambda j, i: (i, 0)),       # h tile
                pl.BlockSpec((Cp, tile_n), lambda j, i: (0, j)),       # W2 column block
                pl.BlockSpec((1, tile_n), lambda j, i: (0, j)),        # b2 chunk
            ],
            out_specs=pl.BlockSpec((tile_b, tile_n), lambda j, i: (i, j)),
        ),
        compiler_params=pltpu.CompilerParams(
            dimension_semantics=("parallel", "parallel"),
            vmem_limit_bytes=64 * 1024 * 1024,
        ),
        cost_estimate=dec_cost,
    )(h, w2p, b2p)

    return yp[:B, :Din]


def reference(x, w1, b1, w2, b2):
    h = jnp.maximum(x @ w1 + b1.reshape(1, -1), 0.0)
    return jax.nn.sigmoid(h @ w2 + b2.reshape(1, -1))


if __name__ == "__main__":
    # Small shapes consistent with the module (input_dims -> code_dims -> input_dims).
    # code_dims=100 (the real value) exercises the pad-to-128 path; batch=200
    # exercises batch padding; input_dims=1024 gives 2 K-steps and 2 N-chunks.
    batch = 200
    input_dims = 1024   # small stand-in for 256*13*13
    code_dims = 100

    key = jax.random.PRNGKey(0)
    kx, k1, kb1, k2, kb2 = jax.random.split(key, 5)

    x = jax.random.normal(kx, (batch, input_dims), dtype=jnp.float32)

    # Deterministic PyTorch-Linear-style init (uniform +/- 1/sqrt(fan_in)),
    # weights stored transposed: (in_features, out_features).
    bound1 = 1.0 / (input_dims ** 0.5)
    w1 = jax.random.uniform(k1, (input_dims, code_dims), jnp.float32, -bound1, bound1)
    b1 = jax.random.uniform(kb1, (code_dims,), jnp.float32, -bound1, bound1)

    bound2 = 1.0 / (code_dims ** 0.5)
    w2 = jax.random.uniform(k2, (code_dims, input_dims), jnp.float32, -bound2, bound2)
    b2 = jax.random.uniform(kb2, (input_dims,), jnp.float32, -bound2, bound2)

    out = autoencoder(x, w1, b1, w2, b2)
    jax.block_until_ready(out)

    ref = reference(x, w1, b1, w2, b2)
    assert out.shape == (batch, input_dims)
    # bf16 matmul operands (f32 accumulation) -> relaxed tolerance on sigmoid output.
    assert jnp.allclose(out, ref, atol=2e-2, rtol=0.0), "mismatch vs reference"
    print("KERNEL_OK")
</pallas_src>

<mosaic_0001>
module attributes {stable_mosaic.version = 11 : i64} {
  func.func @_encoder_kernel(%arg0: i32, %arg1: i32, %arg2: memref<128x512xbf16, #tpu.memory_space<vmem>>, %arg3: memref<512x128xbf16, #tpu.memory_space<vmem>>, %arg4: memref<1x128xf32, #tpu.memory_space<vmem>>, %arg5: memref<128x128xbf16, #tpu.memory_space<vmem>>, %arg6: memref<128x128xf32, #tpu.memory_space<vmem>>) attributes {dimension_semantics = [#tpu.dimension_semantics<parallel>, #tpu.dimension_semantics<arbitrary>], iteration_bounds = array<i64: 2, 2>, scalar_prefetch = 0 : i64, scratch_operands = 1 : i64, tpu.core_type = #tpu.core_type<tc>, window_params = [{transform_indices = @transform_0, window_bounds = array<i64: 128, 512>}, {transform_indices = @transform_1, window_bounds = array<i64: 512, 128>}, {pipeline_mode = #tpu.pipeline_mode<synchronous>, transform_indices = @transform_2, window_bounds = array<i64: 1, 128>}, {transform_indices = @transform_3, window_bounds = array<i64: 128, 128>}]} {
    %c0_i32 = arith.constant 0 : i32
    %0 = arith.cmpi eq, %arg1, %c0_i32 : i32
    %1 = arith.extui %0 : i1 to i32
    %c0_i32_0 = arith.constant 0 : i32
    %2 = arith.cmpi ne, %1, %c0_i32_0 : i32
    scf.if %2 {
      %cst_9 = arith.constant 0.000000e+00 : f32
      %12 = vector.broadcast %cst_9 : f32 to vector<128x128xf32>
      %c0_10 = arith.constant 0 : index
      %c0_11 = arith.constant 0 : index
      %13 = vector.load %arg6[%c0_10, %c0_11] : memref<128x128xf32, #tpu.memory_space<vmem>>, vector<128x128xf32>
      tpu.vector_store %arg6[%c0_10, %c0_11], %12 {strides = array<i32>} : memref<128x128xf32, #tpu.memory_space<vmem>>, vector<128x128xf32>,
    } else {
    }
    %c0 = arith.constant 0 : index
    %c0_1 = arith.constant 0 : index
    %3 = vector.load %arg6[%c0, %c0_1] : memref<128x128xf32, #tpu.memory_space<vmem>>, vector<128x128xf32>
    %c0_2 = arith.constant 0 : index
    %c0_3 = arith.constant 0 : index
    %4 = vector.load %arg2[%c0_2, %c0_3] : memref<128x512xbf16, #tpu.memory_space<vmem>>, vector<128x512xbf16>
    %c0_4 = arith.constant 0 : index
    %c0_5 = arith.constant 0 : index
    %5 = vector.load %arg3[%c0_4, %c0_5] : memref<512x128xbf16, #tpu.memory_space<vmem>>, vector<512x128xbf16>
    %cst = arith.constant dense<0.000000e+00> : vector<128x128xf32>
    %6 = tpu.matmul %4, %5, %cst {dimension_numbers = #tpu.dot_dimension_numbers<[1], [0], [0], [1], [0, 0, 1, 1], [], []>} : vector<128x512xbf16>, vector<512x128xbf16>, vector<128x128xf32> -> vector<128x128xf32>
    %7 = arith.addf %3, %6 : vector<128x128xf32>
    %c0_6 = arith.constant 0 : index
    %c0_7 = arith.constant 0 : index
    %8 = vector.load %arg6[%c0_6, %c0_7] : memref<128x128xf32, #tpu.memory_space<vmem>>, vector<128x128xf32>
    tpu.vector_store %arg6[%c0_6, %c0_7], %7 {strides = array<i32>} : memref<128x128xf32, #tpu.memory_space<vmem>>, vector<128x128xf32>,
    %c1_i32 = arith.constant 1 : i32
    %9 = arith.cmpi eq, %arg1, %c1_i32 : i32
    %10 = arith.extui %9 : i1 to i32
    %c0_i32_8 = arith.constant 0 : i32
    %11 = arith.cmpi ne, %10, %c0_i32_8 : i32
    scf.if %11 {
      %c0_9 = arith.constant 0 : index
      %c0_10 = arith.constant 0 : index
      %12 = vector.load %arg6[%c0_9, %c0_10] : memref<128x128xf32, #tpu.memory_space<vmem>>, vector<128x128xf32>
      %c0_11 = arith.constant 0 : index
      %c0_12 = arith.constant 0 : index
      %13 = vector.load %arg4[%c0_11, %c0_12] : memref<1x128xf32, #tpu.memory_space<vmem>>, vector<1x128xf32>
      %14 = vector.broadcast %13 : vector<1x128xf32> to vector<128x128xf32>
      %15 = arith.addf %12, %14 : vector<128x128xf32>
      %cst_13 = arith.constant 0.000000e+00 : f32
      %16 = vector.broadcast %cst_13 : f32 to vector<128x128xf32>
      %17 = arith.maximumf %15, %16 : vector<128x128xf32>
      %18 = arith.truncf %17 : vector<128x128xf32> to vector<128x128xbf16>
      %c0_14 = arith.constant 0 : index
      %c0_15 = arith.constant 0 : index
      %19 = vector.load %arg5[%c0_14, %c0_15] : memref<128x128xbf16, #tpu.memory_space<vmem>>, vector<128x128xbf16>
      tpu.vector_store %arg5[%c0_14, %c0_15], %18 {strides = array<i32>} : memref<128x128xbf16, #tpu.memory_space<vmem>>, vector<128x128xbf16>,
    } else {
    }
    return
  }
  func.func @transform_0(%arg0: i32, %arg1: i32) -> (i32, i32) {
    %c0_i32 = arith.constant 0 : i32
    return %arg0, %arg1 : i32, i32
  }
  func.func @transform_1(%arg0: i32, %arg1: i32) -> (i32, i32) {
    %c0_i32 = arith.constant 0 : i32
    %c0_i32_0 = arith.constant 0 : i32
    return %arg1, %c0_i32 : i32, i32
  }
  func.func @transform_2(%arg0: i32, %arg1: i32) -> (i32, i32) {
    %c0_i32 = arith.constant 0 : i32
    %c0_i32_0 = arith.constant 0 : i32
    %c0_i32_1 = arith.constant 0 : i32
    return %c0_i32, %c0_i32_0 : i32, i32
  }
  func.func @transform_3(%arg0: i32, %arg1: i32) -> (i32, i32) {
    %c0_i32 = arith.constant 0 : i32
    %c0_i32_0 = arith.constant 0 : i32
    return %arg0, %c0_i32 : i32, i32
  }
}

</mosaic_0001>

<bundles_post_ra>
// kernel: tpu_custom_call.1
= control target key start
LH: loop header
LB: loop body
LE: loop exit
PB: predicated region body
PF: predicated region fallthrough
CT: control target
= control target key end

     0   :  { %s2499_s0 = inlined_call_operand.hbm [shape: bf16[256,1024], index: 0, kind: input, shape index: {}]   ;;  %s2500_s1 = inlined_call_operand.hbm [shape: bf16[1024,128], index: 1, kind: input, shape index: {}]   ;;  %s2501_s2 = inlined_call_operand.hbm [shape: f32[1,128], index: 2, kind: input, shape index: {}]   ;;  %s2502_s3 = inlined_call_operand.hbm [shape: bf16[256,128], index: 3, kind: output, shape index: {}]  }
   0x1   :  { %2525 = sst [smem:[#allocation25_spill]] %s2499_s0 }
   0x2   :  { %2526 = sst [smem:[#allocation26_spill]] %s2501_s2 }
   0x3   :  { %2527 = sst [smem:[#allocation27_spill]] %s2502_s3 }
   0x4   :  { %8 = vsyncpa [#allocation4], 0 }
   0x5   :  { %10 = vsyncpa [#allocation4 + $0x1], 0 }
   0x6   :  { %11 = vsyncpa [#allocation7], 0 }
   0x7   :  { %13 = vsyncpa [#allocation7 + $0x1], 0 }
   0x8   :  { %14 = vsyncpa [#allocation5], 0 }
   0x9   :  { %16 = vsyncpa [#allocation5 + $0x1], 0  ;;  %s2051_s12 = smov 0   ;;  %s2053_s13 = smov 0  }
   0xa   :  { %s2055_s14 = smov 0   ;;  %s2057_s15 = smov 0  }
   0xb   :  { %s2059_s16 = smov 0   ;;  %s2061_s17 = smov 0  }
   0xc   :  { %s2063_s18 = smov 0   ;;  %s2065_s19 = smov 0  }
   0xd   :  { %s2067_s20 = smov 0   ;;  %s2069_s21 = smov 0  }
   0xe   :  { %s2071_s22 = smov 0   ;;  %s2073_s23 = smov 0  }
   0xf   :  { %s2075_s24 = smov 0   ;;  %s2077_s25 = smov 0  }
  0x10 LB: > { %2528 = sst [smem:[#allocation14_spill]] %s1965_s12  ;;  %s2118_s26 = sadd.s32 4294967295, %s2017_s25   ;;  %s2017_s25 = sphi %s2077_s25, %s22_s25   ;;  %s2013_s24 = sphi %s2075_s24, %s2591_s24   ;;  %s2009_s23 = sphi %s2073_s23, %s2590_s23   ;;  %s2005_s22 = sphi %s2071_s22, %s2589_s22   ;;  %s2001_s21 = sphi %s2069_s21, %s2588_s21   ;;  %s1997_s20 = sphi %s2067_s20, %s2587_s20   ;;  %s1993_s19 = sphi %s2065_s19, %s2586_s19   ;;  %s1989_s18 = sphi %s2063_s18, %s2585_s18   ;;  %s1985_s17 = sphi %s2061_s17, %s2584_s17   ;;  %s1981_s16 = sphi %s2059_s16, %s2583_s16   ;;  %s1977_s15 = sphi %s2057_s15, %s2579_s15   ;;  %s1973_s14 = sphi %s2055_s14, %s2582_s14   ;;  %s1969_s13 = sphi %s2053_s13, %s2581_s13   ;;  %s1965_s12 = sphi %s2051_s12, %s2578_s12  }
  0x11   : > { %2529 = sst [smem:[#allocation15_spill]] %s1969_s13  ;;  %s1246_s27 = sadd.s32 4294967294, %s2017_s25  }
  0x12   : > { %2530 = sst [smem:[#allocation16_spill]] %s1981_s16  ;;  %p50_p0 = scmp.ne.s32.totalorder %s1997_s20, %s1993_s19 }
  0x13   : > { %2531 = sst [smem:[#allocation17_spill]] %s2001_s21  ;;  %p51_p1 = scmp.eq.s32.totalorder %s2017_s25, 0 }
  0x14   : > { %2532 = sst [smem:[#allocation18_spill]] %s2005_s22  ;;  %p56_p2 = scmp.ne.s32.totalorder %s1993_s19, %s1989_s18 }
  0x15   : > { %2533 = sst [smem:[#allocation19_spill]] %s2118_s26  ;;  %p2503_p3 = scmp.eq.s32.totalorder %s2118_s26, 0 }
  0x16   : > { %p2128_p4 = por %p51_p1, %p50_p0  ;;  %p76_p5 = scmp.ne.s32.totalorder %s1985_s17, %s1981_s16 }
  0x17   : > { %p2136_p6 = por %p2503_p3, %p56_p2  ;;  %p82_p7 = scmp.ne.s32.totalorder %s1981_s16, %s1977_s15 }
  0x18   : > { %p2141_p8 = por %p76_p5, %p51_p1  ;;  %p126_p10 = scmp.ne.s32.totalorder %s1973_s14, %s1969_s13 }
  0x19   : > { %s2535_s4 = scalar_select %p2136_p6, 1, 0 }
  0x1a   : > { %p2148_p9 = por %p82_p7, %p2503_p3  ;;  %p127_p11 = scmp.eq.s32.totalorder %s2118_s26, 3 }
  0x1b   : > { %2536 = sst [smem:[#allocation20_spill]] %s2535_s4  ;;  %p132_p12 = scmp.ne.s32.totalorder %s1969_s13, %s1965_s12 }
  0x1c   : > { %s2538_s7 = scalar_select %p2148_p9, 1, 0 }
  0x1d   : > { %p133_p13 = scmp.eq.s32.totalorder %s1246_s27, 3  ;;  %p1247_p0 = scmp.ge.s32.totalorder %s2017_s25, 1 }
  0x1e   : > { %2539 = sst [smem:[#allocation21_spill]] %s2538_s7  ;;  %p2158_p2 = por %p127_p11, %p126_p10 }
  0x1f   : > { %p140_p1 = scmp.lt.s32.totalorder %s2017_s25, 5  ;;  %p2163_p5 = por %p133_p13, %p132_p12 }
  0x20   : > { %s2540_s8 = scalar_select %p2158_p2, 1, 0 }
  0x21   : > { %s2542_s9 = scalar_select %p2163_p5, 1, 0 }
  0x22   : > { %2541 = sst [smem:[#allocation22_spill]] %s2540_s8  ;;  %p2167_p7 = pnand %p1247_p0, %p140_p1 }
  0x23   : > { %2543 = sst [smem:[#allocation23_spill]] %s2542_s9  ;;  %s2019_s11 = smov [#allocation8]  }
  0x24   : > { %s2544_s10 = scalar_select %p2167_p7, 1, 0 }
  0x25   : > { %s153_s15 = sshll.u32 %s2019_s11, 4  ;;  %p1555_p3 = pneg %p2167_p7  ;;  %s154_s15 = int_to_ptr.vmem [resolvable:$true] %s153_s15 }
  0x26   : > { %p1571_p9 = scmp.lt.s32.totalorder %s2017_s25, 4  ;;  %p2545_p10 = scmp.eq.s32.totalorder %s2118_s26, 0 }
  0x27   : > { %s2549_s2 = sld [smem:[#allocation26_spill]] }
  0x28   : > { %p2176_p11 = pnand %p1555_p3, %p2545_p10  ;;  %p2182_p12 = pnand %p1571_p9, %p2128_p4 }
  0x29   : > { %p2188_p13 = pnand %p1571_p9, %p2141_p8 }
  0x2a   : > { %s2547_s27 = scalar_select %p2182_p12, 1, 0 }
  0x2b   : > { %s2548_s28 = scalar_select %p2188_p13, 1, 0 }
  0x2c   : > { %p1777_p0 = pneg %p2176_p11 }
  0x2d   : > { %s1775_s29 = scalar_lea.hbm %s2549_s2, 16 }
  0x2e   : > { %p1776_p3 = scmp.ne.s32.totalorder %s2549_s2, %s1775_s29  ;;  %p1782_p10 = scmp.lt.u32.totalorder %s1775_s29, %s2549_s2 }
  0x30   : > { %p1778_p1 = pnand %p1777_p0, %p1776_p3 }
  0x32   : > { %p1779_p4 = pneg %p1778_p1 }
  0x34   : > { %p1784_p8 = pnand %p1782_p10, %p1779_p4 }
  0x36   : > { %1787 = shalt.err (!%p1784_p8)
}
  0x37   : > { %s1788_s5 = scalar_lea.vmem %s154_s15, 16  ;;  %s1795_s6 = scalar_lea.vmem %s154_s15, 32 }
  0x38   : > { %p1789_p9 = scmp.ne.s32.totalorder %s154_s15, %s1788_s5  ;;  %p1796_p6 = scmp.lt.s32.totalorder %s154_s15, %s154_s15 }
  0x39   : > { %p1797_p7 = scmp.lt.s32.totalorder %s1795_s6, %s1788_s5 }
  0x3a   : > { %p1791_p5 = pnand %p1789_p9, %p1777_p0 }
  0x3b   : > { %p1798_p13 = por %p1797_p7, %p1796_p6 }
  0x3c   : > { %p1792_p2 = pneg %p1791_p5 }
  0x3e   : > { %p1799_p12 = pnand %p1798_p13, %p1792_p2 }
  0x40   : > { %1802 = shalt.err (!%p1799_p12)
}
  0x41   : > { %1558 = dma.hbm_to_vmem [thread:$0]  (!%p2176_p11), %s2549_s2, 16, %s154_s15, [#allocation7]  }
  0x42   : > { %s34_s3 = sadd.s32 1, %s2013_s24  ;;  %s31_s29 = sadd.s32 1, %s2009_s23 }
  0x43   : > { %s164_s11 = sand.u32 1, %s1997_s20   ;;  %p32_p6 = scmp.ge.s32.totalorder %s31_s29, 2 }
  0x44   : > { %s1250_s30 = sshll.u32 %s164_s11, 8  ;;  %s1252_s18 = sshll.u32 %s2009_s23, 2 }
  0x45   : > { %s2593_s29 = smov (%p32_p6, %s31_s29), 0  ;;  %s2595_s3 = smov (!%p32_p6, %s34_s3), %s2013_s24 }
  0x46   : > { %2550 = sst [smem:[#allocation24_spill]] %s2593_s29  ;;  %s39_s5 = ssub.s32 %s2009_s23, %s2593_s29 }
  0x47   : > { %p36_p2 = scmp.ge.s32.totalorder %s2595_s3, 2  ;;  %p67_p5 = scmp.eq.s32.totalorder %s39_s5, 0 }
  0x48   : > { %s1351_s15 = sshll.u32 %s2013_s24, 7  ;;  %s168_s6 = scalar_lea.vmem [#allocation3], %s1250_s30 }
  0x49   : > { %s178_s12 = sshll.u32 %s168_s6, 4  ;;  %s2597_s3 = smov (%p36_p2, %s2595_s3), 0  ;;  %s2242_s12 = int_to_ptr.vmem [resolvable:$true] %s178_s12 }
  0x4a   : > { %s2551_s9 = sadd.s32 1, %s1985_s17  ;;  %s38_s8 = ssub.s32 %s2013_s24, %s2597_s3 }
  0x4b   : > { %s2223_s2 = scalar_select %p67_p5, %s1985_s17, %s2551_s9  }
  0x4c   : > { %s175_s22 = sadd.s32 %s1351_s15, %s1252_s18  ;;  %s40_s21 = sor.u32 %s39_s5, %s38_s8 }
  0x4d   : > { %p114_p7 = scmp.eq.s32.totalorder %s38_s8, 0  ;;  %p41_p11 = scmp.eq.s32.totalorder %s40_s21, 0 }
  0x4e   : > { %s1254_s29 = sshll.u32 %s175_s22, 6  ;;  %s2552_s13 = sadd.s32 1, %s1973_s14 }
  0x4f   : > { %s2230_s7 = scalar_select %p114_p7, %s1973_s14, %s2552_s13  }
  0x50   : > { %s2553_s16 = sadd.s32 1, %s1997_s20  ;;  %s2554_s0 = sld [smem:[#allocation25_spill]] }
  0x51   : > { %s2235_s30 = scalar_select %p41_p11, %s1997_s20, %s2553_s16  }
  0x52   : > { %s188_s8 = sand.u32 1, %s2017_s25   ;;  %s2245_s21 = scalar_lea.sflag [#allocation4], %s164_s11 }
  0x53   : > { %p2555_p13 = scmp.ne.s32.totalorder %s2547_s27, 0 }
  0x55   : > { %p1805_p3 = pneg %p2555_p13 }
  0x56   : > { %s2240_s4 = scalar_lea.hbm %s2554_s0, %s1254_s29  ;;  %s1808_s26 = scalar_lea.hbm %s2554_s0, 16384 }
  0x57   : > { %s1803_s22 = scalar_lea.hbm %s2240_s4, 4096  ;;  %p1809_p4 = scmp.lt.u32.totalorder %s2240_s4, %s2554_s0 }
  0x58   : > { %p1804_p12 = scmp.ne.s32.totalorder %s2240_s4, %s1803_s22  ;;  %p1810_p10 = scmp.lt.u32.totalorder %s1808_s26, %s1803_s22 }
  0x59   : > { %p1812_p9 = scmp.lt.u32.totalorder %s1803_s22, %s2240_s4 }
  0x5a   : > { %p1806_p0 = pnand %p1805_p3, %p1804_p12  ;;  %p1811_p8 = por %p1810_p10, %p1809_p4 }
  0x5c   : > { %p1807_p1 = pneg %p1806_p0  ;;  %p1813_p6 = por %p1812_p9, %p1811_p8 }
  0x5e   : > { %p1814_p2 = pnand %p1813_p6, %p1807_p1 }
  0x60   : > { %1817 = shalt.err (!%p1814_p2)
}
  0x61   : > { %s1818_s11 = scalar_lea.vmem %s2242_s12, 4096  ;;  %s2020_s5 = smov [#allocation3]  }
  0x62   : > { %p1819_p5 = scmp.ne.s32.totalorder %s2242_s12, %s1818_s11  ;;  %s1823_s15 = sshll.u32 %s2020_s5, 4  ;;  %s1824_s15 = int_to_ptr.vmem [resolvable:$false] %s1823_s15 }
  0x63   : > { %s1825_s9 = scalar_lea.vmem %s1824_s15, 8192  ;;  %p1826_p12 = scmp.lt.s32.totalorder %s2242_s12, %s1824_s15 }
  0x64   : > { %p1821_p7 = pnand %p1819_p5, %p1805_p3  ;;  %p1827_p0 = scmp.lt.s32.totalorder %s1825_s9, %s1818_s11 }
  0x66   : > { %p1822_p11 = pneg %p1821_p7  ;;  %p1828_p4 = por %p1827_p0, %p1826_p12 }
  0x68   : > { %p1829_p10 = pnand %p1828_p4, %p1822_p11 }
  0x6a   : > { %1832 = shalt.err (!%p1829_p10)
}
  0x6b   : > { %s2021_s6 = smov 512   ;;  %s2022_s22 = smov 256  }
  0x6c   : > { %s2023_s13 = smov 16   ;;  %s190_s16 = sand.u32 1, %s1985_s17  }
  0x6d   : > { %1562 = dma.hbm_to_vmem [thread:$0]  (!%p2555_p13), %s2240_s4, 4096, %s2242_s12, %s2245_s21, %s2021_s6, %s2022_s22, %s2023_s13  }
  0x6e   : > { %s1255_s26 = sshll.u32 %s190_s16, 8  ;;  %s1352_s29 = sshll.u32 %s2009_s23, 12 }
  0x6f   : > { %s2278_s5 = scalar_lea.hbm %s2500_s1, %s1352_s29  ;;  %s192_s15 = scalar_lea.vmem [#allocation6], %s1255_s26 }
  0x70   : > { %s199_s9 = sshll.u32 %s192_s15, 4  ;;  %s2284_s0 = scalar_lea.sflag [#allocation7], %s188_s8  ;;  %s2280_s9 = int_to_ptr.vmem [resolvable:$true] %s199_s9 }
  0x71   : > { %s1833_s4 = scalar_lea.hbm %s2278_s5, 4096  ;;  %p2556_p3 = scmp.ne.s32.totalorder %s2548_s28, 0 }
  0x72   : > { %p1834_p13 = scmp.ne.s32.totalorder %s2278_s5, %s1833_s4  ;;  %s1838_s21 = scalar_lea.hbm %s2500_s1, 8192 }
  0x73   : > { %p1835_p1 = pneg %p2556_p3  ;;  %p1839_p6 = scmp.lt.u32.totalorder %s2278_s5, %s2500_s1 }
  0x74   : > { %p1840_p2 = scmp.lt.u32.totalorder %s1838_s21, %s1833_s4  ;;  %p1842_p7 = scmp.lt.u32.totalorder %s1833_s4, %s2278_s5 }
  0x75   : > { %p1836_p8 = pnand %p1835_p1, %p1834_p13 }
  0x76   : > { %p1841_p5 = por %p1840_p2, %p1839_p6 }
  0x77   : > { %p1837_p9 = pneg %p1836_p8 }
  0x78   : > { %p1843_p11 = por %p1842_p7, %p1841_p5 }
  0x7a   : > { %p1844_p12 = pnand %p1843_p11, %p1837_p9 }
  0x7c   : > { %1847 = shalt.err (!%p1844_p12)
}
  0x7d   : > { %s1848_s8 = scalar_lea.vmem %s2280_s9, 4096  ;;  %s2024_s13 = smov [#allocation6]  }
  0x7e   : > { %p1849_p0 = scmp.ne.s32.totalorder %s2280_s9, %s1848_s8  ;;  %s1853_s16 = sshll.u32 %s2024_s13, 4  ;;  %s1854_s16 = int_to_ptr.vmem [resolvable:$false] %s1853_s16 }
  0x7f   : > { %s1855_s26 = scalar_lea.vmem %s1854_s16, 8192  ;;  %p1856_p13 = scmp.lt.s32.totalorder %s2280_s9, %s1854_s16 }
  0x80   : > { %p1851_p4 = pnand %p1849_p0, %p1835_p1  ;;  %p1857_p8 = scmp.lt.s32.totalorder %s1855_s26, %s1848_s8 }
  0x82   : > { %p1852_p10 = pneg %p1851_p4  ;;  %p1858_p6 = por %p1857_p8, %p1856_p13 }
  0x84   : > { %p1859_p2 = pnand %p1858_p6, %p1852_p10 }
  0x86   : > { %1862 = shalt.err (!%p1859_p2)
}
  0x87   : > { %s2025_s29 = smov 64   ;;  %s2026_s18 = smov 4  }
  0x88   : > { %1565 = dma.hbm_to_vmem [thread:$0]  (!%p2556_p3), %s2278_s5, 4096, %s2280_s9, %s2284_s0, %s2025_s29, %s2025_s29, %s2026_s18  }
  0x89   : > { %p2557_p1 = scmp.ne.s32.totalorder %s2544_s10, 0 }
  0x8a   : > { %s2558_s11 = sld [smem:[#allocation20_spill]] (!%p2557_p1)  ;;  %s213_s15 = sand.u32 (!%p2557_p1), 1, %s1993_s19  }
  0x8b   : > { %211 = sbr.rel (%p2557_p1) target bundleno = 532 (0x214), region = 32  ;;  %s1259_s4 = sshll.u32 (!%p2557_p1), %s213_s15, 8 }
  0x8c   : > { %s214_s27 = scalar_lea.sflag (!%p2557_p1), [#allocation4], %s213_s15  ;;  %s2315_s12 = scalar_lea.vmem (!%p2557_p1), [#allocation3], %s1259_s4 }
  0x90   : > { %p2559_p9 = scmp.ne.s32.totalorder (!%p2557_p1), %s2558_s11, 0 }
  0x92   : > { %1948 = dma.done.wait (%p2559_p9), %s214_s27, 4096  }
  0x93   : > { %1950 = vsyncadd (%p2559_p9), %s214_s27, 4294963200  ;;  %s2560_s21 = sld [smem:[#allocation19_spill]]  ;;  %s2561_s6 = sld [smem:[#allocation16_spill]] }
  0x94   : > { %s2562_s22 = sld [smem:[#allocation21_spill]] }
  0x99   : > { %s222_s28 = sand.u32 1, %s2560_s21   ;;  %s224_s0 = sand.u32 1, %s2561_s6  }
  0x9a   : > { %s1260_s5 = sshll.u32 %s224_s0, 8  ;;  %s223_s10 = scalar_lea.sflag [#allocation7], %s222_s28 }
  0x9b   : > { %s2323_s9 = scalar_lea.vmem [#allocation6], %s1260_s5  ;;  %p2563_p3 = scmp.ne.s32.totalorder %s2562_s22, 0 }
  0x9d   : > { %1952 = dma.done.wait (%p2563_p3), %s223_s10, 4096  }
  0x9e   : > { %1954 = vsyncadd (%p2563_p3), %s223_s10, 4294963200  ;;  %p2564_p5 = scmp.eq.s32.totalorder %s2560_s21, 0 }
  0xa0   : > { %1956 = dma.done.wait (%p2564_p5), [#allocation7], 16   ;;  %p2565_p7 = pmov %p2564_p5 }
  0xa1   : > { %s2566_s8 = sld [smem:[#allocation15_spill]]  ;;  %s2567_s29 = sld [smem:[#allocation17_spill]] }
  0xa2   : > { %1958 = vsyncadd (%p2565_p7), [#allocation7], 4294967280 }
  0xa7   : > { %s255_s13 = sand.u32 1, %s2566_s8   ;;  %p1263_p11 = scmp.ne.s32.totalorder %s2567_s29, 0 }
  0xa8   : > { %s1262_s16 = sshll.u32 %s255_s13, 6  ;;  %v2027_v0 = vmov (!%p1263_p11), 0.0  }
  0xa9   : > { %s2336_s26 = scalar_lea.vmem [#allocation9], %s1262_s16  ;;  %266 = sbr.rel (%p1263_p11) target bundleno = 177 (0xb1), region = 48  ;;  %267 = vst [vmem:[#allocation2] sm:$0xff] (!%p1263_p11), %v2027_v0  ;;  %268 = vst [vmem:[#allocation2 + $0x8] sm:$0xff] (!%p1263_p11), %v2027_v0 }
  0xaa   : > { %269 = vst [vmem:[#allocation2 + $0x10] sm:$0xff] (!%p1263_p11), %v2027_v0  ;;  %270 = vst [vmem:[#allocation2 + $0x18] sm:$0xff] (!%p1263_p11), %v2027_v0 }
  0xab   : > { %271 = vst [vmem:[#allocation2 + $0x20] sm:$0xff] (!%p1263_p11), %v2027_v0  ;;  %272 = vst [vmem:[#allocation2 + $0x28] sm:$0xff] (!%p1263_p11), %v2027_v0 }
  0xac   : > { %273 = vst [vmem:[#allocation2 + $0x30] sm:$0xff] (!%p1263_p11), %v2027_v0  ;;  %274 = vst [vmem:[#allocation2 + $0x38] sm:$0xff] (!%p1263_p11), %v2027_v0 }
  0xad   : > { %275 = vst [vmem:[#allocation2 + $0x40] sm:$0xff] (!%p1263_p11), %v2027_v0  ;;  %276 = vst [vmem:[#allocation2 + $0x48] sm:$0xff] (!%p1263_p11), %v2027_v0 }
  0xae   : > { %277 = vst [vmem:[#allocation2 + $0x50] sm:$0xff] (!%p1263_p11), %v2027_v0  ;;  %278 = vst [vmem:[#allocation2 + $0x58] sm:$0xff] (!%p1263_p11), %v2027_v0 }
  0xaf   : > { %279 = vst [vmem:[#allocation2 + $0x60] sm:$0xff] (!%p1263_p11), %v2027_v0  ;;  %280 = vst [vmem:[#allocation2 + $0x68] sm:$0xff] (!%p1263_p11), %v2027_v0 }
  0xb0   : > { %281 = vst [vmem:[#allocation2 + $0x70] sm:$0xff] %v2027_v0  ;;  %282 = vst [vmem:[#allocation2 + $0x78] sm:$0xff] %v2027_v0 }
  0xb1 PF: > { %v1695_v1 = vld [vmem:[%s2323_s9 + $0x40] sm:$0xff]   ;;  %v1699_v5 = vld [vmem:[%s2323_s9 + $0x48] sm:$0xff]   ;;  %v1703_v9 = vld [vmem:[%s2323_s9 + $0x50] sm:$0xff]   ;;  %s2568_s18 = sld [smem:[#allocation17_spill]] }
  0xb2   : > { %v1696_v2 = vld [vmem:[%s2323_s9 + $0xc0] sm:$0xff]   ;;  %1417 = vmatprep.subr.bf16.mxu0 %v1695_v1  ;;  %v1700_v6 = vld [vmem:[%s2323_s9 + $0xc8] sm:$0xff]   ;;  %v1704_v10 = vld [vmem:[%s2323_s9 + $0xd0] sm:$0xff]  }
  0xb3   : > { %v1697_v3 = vld [vmem:[%s2323_s9] sm:$0xff]   ;;  %1481 = vmatprep.subr.bf16.mxu1 %v1696_v2  ;;  %v1701_v7 = vld [vmem:[%s2323_s9 + $0x8] sm:$0xff]   ;;  %v1705_v11 = vld [vmem:[%s2323_s9 + $0x10] sm:$0xff]  }
  0xb4   : > { %v1698_v4 = vld [vmem:[%s2323_s9 + $0x80] sm:$0xff]   ;;  %1418 = vmatpush3.bf16.msra.mxu0 %v1697_v3  ;;  %v1702_v8 = vld [vmem:[%s2323_s9 + $0x88] sm:$0xff]   ;;  %v1706_v12 = vld [vmem:[%s2323_s9 + $0x90] sm:$0xff]  }
  0xb5   : > { %1482 = vmatpush3.bf16.msra.mxu1 %v1698_v4  ;;  %1419 = vmatprep.subr.bf16.mxu0 %v1699_v5  ;;  %v1707_v13 = vld [vmem:[%s2323_s9 + $0x58] sm:$0xff]   ;;  %v1711_v17 = vld [vmem:[%s2323_s9 + $0x60] sm:$0xff]   ;;  %v1715_v21 = vld [vmem:[%s2323_s9 + $0x68] sm:$0xff]  }
  0xb6   : > { %1483 = vmatprep.subr.bf16.mxu1 %v1700_v6  ;;  %v1708_v14 = vld [vmem:[%s2323_s9 + $0xd8] sm:$0xff]   ;;  %v1712_v18 = vld [vmem:[%s2323_s9 + $0xe0] sm:$0xff]   ;;  %v1716_v22 = vld [vmem:[%s2323_s9 + $0xe8] sm:$0xff]  }
  0xb7   : > { %v1709_v15 = vld [vmem:[%s2323_s9 + $0x18] sm:$0xff]   ;;  %v1713_v19 = vld [vmem:[%s2323_s9 + $0x20] sm:$0xff]   ;;  %v1717_v23 = vld [vmem:[%s2323_s9 + $0x28] sm:$0xff]   ;;  %p1328_p12 = scmp.ne.s32.totalorder %s2568_s18, 1 }
  0xb8   : > { %1420 = vmatpush3.bf16.msra.mxu0 %v1701_v7  ;;  %v1710_v16 = vld [vmem:[%s2323_s9 + $0x98] sm:$0xff]   ;;  %v1714_v20 = vld [vmem:[%s2323_s9 + $0xa0] sm:$0xff]   ;;  %v1718_v24 = vld [vmem:[%s2323_s9 + $0xa8] sm:$0xff]  }
  0xb9   : > { %1484 = vmatpush3.bf16.msra.mxu1 %v1702_v8  ;;  %1421 = vmatprep.subr.bf16.mxu0 %v1703_v9  ;;  %v1719_v25 = vld [vmem:[%s2323_s9 + $0x70] sm:$0xff]   ;;  %v1723_v29 = vld [vmem:[%s2323_s9 + $0x78] sm:$0xff]  }
  0xba   : > { %1485 = vmatprep.subr.bf16.mxu1 %v1704_v10  ;;  %v1720_v26 = vld [vmem:[%s2323_s9 + $0xf0] sm:$0xff]   ;;  %v1724_v30 = vld [vmem:[%s2323_s9 + $0xf8] sm:$0xff]   ;;  %v283_v10 = vld [vmem:[#allocation2] sm:$0xff] }
  0xbb   : > { %v1721_v27 = vld [vmem:[%s2323_s9 + $0x30] sm:$0xff]   ;;  %v1725_v31 = vld [vmem:[%s2323_s9 + $0x38] sm:$0xff]  }
  0xbc   : > { %1422 = vmatpush3.bf16.msra.mxu0 %v1705_v11  ;;  %v1722_v28 = vld [vmem:[%s2323_s9 + $0xb0] sm:$0xff]   ;;  %v1726_v32 = vld [vmem:[%s2323_s9 + $0xb8] sm:$0xff]  }
  0xbd   : > { %1486 = vmatpush3.bf16.msra.mxu1 %v1706_v12  ;;  %1423 = vmatprep.subr.bf16.mxu0 %v1707_v13  ;;  %v1727_v33 = vld [vmem:[%s2315_s12] ss:$16 sps:$4 sm:$0xff]   ;;  %v1729_v34 = vld [vmem:[%s2315_s12 + $0x4] ss:$16 sps:$4 sm:$0xff]   ;;  %v1730_v35 = vld [vmem:[%s2315_s12 + $0x8] ss:$16 sps:$4 sm:$0xff]  }
  0xbe   : > { %1487 = vmatprep.subr.bf16.mxu1 %v1708_v14  ;;  %v1732_v36 = vld [vmem:[%s2315_s12 + $0xc] ss:$16 sps:$4 sm:$0xff]   ;;  %779 = vmatprep.mubr.bf16.mxu0 %v1729_v34  ;;  %v1733_v37 = vld [vmem:[%s2315_s12 + $0x24] ss:$16 sps:$4 sm:$0xff]   ;;  %v1737_v39 = vld [vmem:[%s2315_s12 + $0x20] ss:$16 sps:$4 sm:$0xff]  }
  0xbf   : > { %876 = vmatprep.mubr.bf16.mxu1 %v1732_v36  ;;  %v1735_v38 = vld [vmem:[%s2315_s12 + $0x2c] ss:$16 sps:$4 sm:$0xff]   ;;  %v1738_v40 = vld [vmem:[%s2315_s12 + $0x28] ss:$16 sps:$4 sm:$0xff]   ;;  %v1739_v41 = vld [vmem:[%s2315_s12 + $0x44] ss:$16 sps:$4 sm:$0xff]  }
  0xc0   : > { %1424 = vmatpush3.bf16.msra.mxu0 %v1709_v15  ;;  %v1741_v42 = vld [vmem:[%s2315_s12 + $0x4c] ss:$16 sps:$4 sm:$0xff]   ;;  %v1743_v43 = vld [vmem:[%s2315_s12 + $0x40] ss:$16 sps:$4 sm:$0xff]   ;;  %v1744_v44 = vld [vmem:[%s2315_s12 + $0x48] ss:$16 sps:$4 sm:$0xff]  }
  0xc1   : > { %1488 = vmatpush3.bf16.msra.mxu1 %v1710_v16  ;;  %1425 = vmatprep.subr.bf16.mxu0 %v1711_v17  ;;  %v1745_v45 = vld [vmem:[%s2315_s12 + $0x64] ss:$16 sps:$4 sm:$0xff]   ;;  %v1747_v46 = vld [vmem:[%s2315_s12 + $0x6c] ss:$16 sps:$4 sm:$0xff]   ;;  %v1749_v47 = vld [vmem:[%s2315_s12 + $0x60] ss:$16 sps:$4 sm:$0xff]  }
  0xc2   : > { %1489 = vmatprep.subr.bf16.mxu1 %v1712_v18  ;;  %v1750_v48 = vld [vmem:[%s2315_s12 + $0x68] ss:$16 sps:$4 sm:$0xff]   ;;  %v1751_v49 = vld [vmem:[%s2315_s12 + $0x84] ss:$16 sps:$4 sm:$0xff]   ;;  %v1753_v50 = vld [vmem:[%s2315_s12 + $0x8c] ss:$16 sps:$4 sm:$0xff]  }
  0xc3   : > { %v1755_v51 = vld [vmem:[%s2315_s12 + $0x80] ss:$16 sps:$4 sm:$0xff]   ;;  %v1756_v52 = vld [vmem:[%s2315_s12 + $0x88] ss:$16 sps:$4 sm:$0xff]   ;;  %v1757_v53 = vld [vmem:[%s2315_s12 + $0xa4] ss:$16 sps:$4 sm:$0xff]  }
  0xc4   : > { %1426 = vmatpush3.bf16.msra.mxu0 %v1713_v19  ;;  %v1759_v54 = vld [vmem:[%s2315_s12 + $0xac] ss:$16 sps:$4 sm:$0xff]   ;;  %v1761_v55 = vld [vmem:[%s2315_s12 + $0xa0] ss:$16 sps:$4 sm:$0xff]   ;;  %v1762_v56 = vld [vmem:[%s2315_s12 + $0xa8] ss:$16 sps:$4 sm:$0xff]  }
  0xc5   : > { %1490 = vmatpush3.bf16.msra.mxu1 %v1714_v20  ;;  %1427 = vmatprep.subr.bf16.mxu0 %v1715_v21  ;;  %v1763_v57 = vld [vmem:[%s2315_s12 + $0xc4] ss:$16 sps:$4 sm:$0xff]   ;;  %v1765_v58 = vld [vmem:[%s2315_s12 + $0xcc] ss:$16 sps:$4 sm:$0xff]   ;;  %v1767_v59 = vld [vmem:[%s2315_s12 + $0xc0] ss:$16 sps:$4 sm:$0xff]  }
  0xc6   : > { %1491 = vmatprep.subr.bf16.mxu1 %v1716_v22  ;;  %v1768_v60 = vld [vmem:[%s2315_s12 + $0xc8] ss:$16 sps:$4 sm:$0xff]   ;;  %v1769_v61 = vld [vmem:[%s2315_s12 + $0xe4] ss:$16 sps:$4 sm:$0xff]   ;;  %v1771_v62 = vld [vmem:[%s2315_s12 + $0xec] ss:$16 sps:$4 sm:$0xff]  }
  0xc7   : > { %v1773_v63 = vld [vmem:[%s2315_s12 + $0xe0] ss:$16 sps:$4 sm:$0xff]   ;;  %v1774_v0 = vld [vmem:[%s2315_s12 + $0xe8] ss:$16 sps:$4 sm:$0xff]  }
  0xc8   : > { %1428 = vmatpush3.bf16.msra.mxu0 %v1717_v23  ;;  %v284_v15 = vld [vmem:[#allocation2 + $0x8] sm:$0xff] }
  0xc9   : > { %1492 = vmatpush3.bf16.msra.mxu1 %v1718_v24  ;;  %1429 = vmatprep.subr.bf16.mxu0 %v1719_v25 }
  0xca   : > { %1493 = vmatprep.subr.bf16.mxu1 %v1720_v26 }
  0xcc   : > { %1430 = vmatpush3.bf16.msra.mxu0 %v1721_v27 }
  0xcd   : > { %1494 = vmatpush3.bf16.msra.mxu1 %v1722_v28  ;;  %1431 = vmatprep.subr.bf16.mxu0 %v1723_v29  ;;  %v285_v28 = vld [vmem:[#allocation2 + $0x10] sm:$0xff] }
  0xce   : > { %1495 = vmatprep.subr.bf16.mxu1 %v1724_v30 }
  0xd0   : > { %1432 = vmatpush3.bf16.msra.mxu0 %v1725_v31 }
  0xd1   : > { %1496 = vmatpush3.bf16.msra.mxu1 %v1726_v32 }
  0xd3   : > { %780 = vmatmul.mubr.bf16.vlgmr.msra.gmra.mrb[0].mxu0 %v1727_v33  ;;  %v286_v33 = vld [vmem:[#allocation2 + $0x18] sm:$0xff] }
  0xd4   : > { %877 = vmatmul.mubr.bf16.vlgmr.msra.gmra.mrb[0].mxu1 %v1730_v35  ;;  %787 = vmatprep.mubr.bf16.mxu0 %v1733_v37 }
  0xd5   : > { %884 = vmatprep.mubr.bf16.mxu1 %v1735_v38 }
  0xdb   : > { %788 = vmatmul.mubr.bf16.gmra.mrb[4].mxu0 %v1737_v39 }
  0xdc   : > { %885 = vmatmul.mubr.bf16.gmra.mrb[4].mxu1 %v1738_v40  ;;  %795 = vmatprep.mubr.bf16.mxu0 %v1739_v41 }
  0xdd   : > { %892 = vmatprep.mubr.bf16.mxu1 %v1741_v42 }
  0xe3   : > { %796 = vmatmul.mubr.bf16.gmra.mrb[8].mxu0 %v1743_v43 }
  0xe4   : > { %893 = vmatmul.mubr.bf16.gmra.mrb[8].mxu1 %v1744_v44  ;;  %803 = vmatprep.mubr.bf16.mxu0 %v1745_v45 }
  0xe5   : > { %900 = vmatprep.mubr.bf16.mxu1 %v1747_v46  ;;  %v287_v46 = vld [vmem:[#allocation2 + $0x20] sm:$0xff] }
  0xeb   : > { %804 = vmatmul.mubr.bf16.gmra.mrb[12].mxu0 %v1749_v47 }
  0xec   : > { %901 = vmatmul.mubr.bf16.gmra.mrb[12].mxu1 %v1750_v48  ;;  %811 = vmatprep.mubr.bf16.mxu0 %v1751_v49 }
  0xed   : > { %908 = vmatprep.mubr.bf16.mxu1 %v1753_v50 }
  0xf3   : > { %812 = vmatmul.mubr.bf16.gmra.mrb[16].mxu0 %v1755_v51  ;;  %v288_v51 = vld [vmem:[#allocation2 + $0x28] sm:$0xff] }
  0xf4   : > { %909 = vmatmul.mubr.bf16.gmra.mrb[16].mxu1 %v1756_v52  ;;  %819 = vmatprep.mubr.bf16.mxu0 %v1757_v53 }
  0xf5   : > { %916 = vmatprep.mubr.bf16.mxu1 %v1759_v54 }
  0xfb   : > { %820 = vmatmul.mubr.bf16.gmra.mrb[20].mxu0 %v1761_v55 }
  0xfc   : > { %917 = vmatmul.mubr.bf16.gmra.mrb[20].mxu1 %v1762_v56  ;;  %827 = vmatprep.mubr.bf16.mxu0 %v1763_v57 }
  0xfd   : > { %924 = vmatprep.mubr.bf16.mxu1 %v1765_v58 }
 0x103   : > { %828 = vmatmul.mubr.bf16.gmra.mrb[24].mxu0 %v1767_v59 }
 0x104   : > { %925 = vmatmul.mubr.bf16.gmra.mrb[24].mxu1 %v1768_v60  ;;  %835 = vmatprep.mubr.bf16.mxu0 %v1769_v61 }
 0x105   : > { %932 = vmatprep.mubr.bf16.mxu1 %v1771_v62 }
 0x10b   : > { %836 = vmatmul.mubr.bf16.gmra.mrb[28].mxu0 %v1773_v63 }
 0x10c   : > { %933 = vmatmul.mubr.bf16.gmra.mrb[28].mxu1 %v1774_v0  ;;  %v289_v0 = vld [vmem:[#allocation2 + $0x30] sm:$0xff] }
 0x1a6   : > { %v1433_v1 = vpop.f32.mrb[0].mxu0 }
 0x1a7   : > { %v1497_v2 = vpop.f32.mrb[0].mxu1  ;;  %v1434_v3 = vpop.f32.mrb[1].mxu0 }
 0x1a8   : > { %v1435_v4 = vadd.f32 %v1434_v3, %v1433_v1  ;;  %v1498_v5 = vpop.f32.mrb[1].mxu1  ;;  %v1436_v6 = vpop.f32.mrb[2].mxu0 }
 0x1a9   : > { %v1499_v7 = vadd.f32 %v1498_v5, %v1497_v2  ;;  %v1500_v8 = vpop.f32.mrb[2].mxu1  ;;  %v1437_v9 = vpop.f32.mrb[3].mxu0  ;;  %v290_v5 = vld [vmem:[#allocation2 + $0x38] sm:$0xff] }
 0x1aa   : > { %v1438_v11 = vadd.f32 %v1437_v9, %v1436_v6  ;;  %v1501_v12 = vpop.f32.mrb[3].mxu1 }
 0x1ab   : > { %v879_v13 = vadd.f32 %v1499_v7, %v1435_v4  ;;  %v1502_v14 = vadd.f32 %v1501_v12, %v1500_v8 }
 0x1ad   : > { %v941_v16 = vadd.f32 %v879_v13, %v283_v10  ;;  %v882_v17 = vadd.f32 %v1502_v14, %v1438_v11 }
 0x1ae   : > { %v1439_v18 = vpop.f32.mrb[4].mxu0 }
 0x1af   : > { %957 = vst [vmem:[#allocation2] sm:$0xff] %v941_v16  ;;  %v942_v19 = vadd.f32 %v882_v17, %v284_v15  ;;  %v1503_v20 = vpop.f32.mrb[4].mxu1  ;;  %v1440_v21 = vpop.f32.mrb[5].mxu0 }
 0x1b0   : > { %v1441_v22 = vadd.f32 %v1440_v21, %v1439_v18  ;;  %v1504_v23 = vpop.f32.mrb[5].mxu1  ;;  %v1442_v24 = vpop.f32.mrb[6].mxu0  ;;  %v291_v18 = vld [vmem:[#allocation2 + $0x40] sm:$0xff] }
 0x1b1   : > { %958 = vst [vmem:[#allocation2 + $0x8] sm:$0xff] %v942_v19  ;;  %v1505_v25 = vadd.f32 %v1504_v23, %v1503_v20  ;;  %v1506_v26 = vpop.f32.mrb[6].mxu1  ;;  %v1443_v27 = vpop.f32.mrb[7].mxu0  ;;  %v292_v23 = vld [vmem:[#allocation2 + $0x48] sm:$0xff] }
 0x1b2   : > { %v1444_v29 = vadd.f32 %v1443_v27, %v1442_v24  ;;  %v1507_v30 = vpop.f32.mrb[7].mxu1 }
 0x1b3   : > { %v887_v31 = vadd.f32 %v1505_v25, %v1441_v22  ;;  %v1508_v32 = vadd.f32 %v1507_v30, %v1506_v26 }
 0x1b5   : > { %v943_v34 = vadd.f32 %v887_v31, %v285_v28  ;;  %v890_v35 = vadd.f32 %v1508_v32, %v1444_v29 }
 0x1b6   : > { %v1445_v36 = vpop.f32.mrb[8].mxu0 }
 0x1b7   : > { %959 = vst [vmem:[#allocation2 + $0x10] sm:$0xff] %v943_v34  ;;  %v944_v37 = vadd.f32 %v890_v35, %v286_v33  ;;  %v1509_v38 = vpop.f32.mrb[8].mxu1  ;;  %v1446_v39 = vpop.f32.mrb[9].mxu0 }
 0x1b8   : > { %v1447_v40 = vadd.f32 %v1446_v39, %v1445_v36  ;;  %v1510_v41 = vpop.f32.mrb[9].mxu1  ;;  %v1448_v42 = vpop.f32.mrb[10].mxu0  ;;  %v293_v36 = vld [vmem:[#allocation2 + $0x50] sm:$0xff] }
 0x1b9   : > { %960 = vst [vmem:[#allocation2 + $0x18] sm:$0xff] %v944_v37  ;;  %v1511_v43 = vadd.f32 %v1510_v41, %v1509_v38  ;;  %v1512_v44 = vpop.f32.mrb[10].mxu1  ;;  %v1449_v45 = vpop.f32.mrb[11].mxu0  ;;  %v294_v41 = vld [vmem:[#allocation2 + $0x58] sm:$0xff] }
 0x1ba   : > { %v1450_v47 = vadd.f32 %v1449_v45, %v1448_v42  ;;  %v1513_v48 = vpop.f32.mrb[11].mxu1 }
 0x1bb   : > { %v895_v49 = vadd.f32 %v1511_v43, %v1447_v40  ;;  %v1514_v50 = vadd.f32 %v1513_v48, %v1512_v44 }
 0x1bd   : > { %v945_v52 = vadd.f32 %v895_v49, %v287_v46  ;;  %v898_v53 = vadd.f32 %v1514_v50, %v1450_v47 }
 0x1be   : > { %v1451_v54 = vpop.f32.mrb[12].mxu0 }
 0x1bf   : > { %961 = vst [vmem:[#allocation2 + $0x20] sm:$0xff] %v945_v52  ;;  %v946_v55 = vadd.f32 %v898_v53, %v288_v51  ;;  %v1515_v56 = vpop.f32.mrb[12].mxu1  ;;  %v1452_v57 = vpop.f32.mrb[13].mxu0 }
 0x1c0   : > { %v1453_v58 = vadd.f32 %v1452_v57, %v1451_v54  ;;  %v1516_v59 = vpop.f32.mrb[13].mxu1  ;;  %v1454_v60 = vpop.f32.mrb[14].mxu0  ;;  %v295_v54 = vld [vmem:[#allocation2 + $0x60] sm:$0xff] }
 0x1c1   : > { %962 = vst [vmem:[#allocation2 + $0x28] sm:$0xff] %v946_v55  ;;  %v1517_v61 = vadd.f32 %v1516_v59, %v1515_v56  ;;  %v1518_v62 = vpop.f32.mrb[14].mxu1  ;;  %v1455_v63 = vpop.f32.mrb[15].mxu0  ;;  %v296_v59 = vld [vmem:[#allocation2 + $0x68] sm:$0xff] }
 0x1c2   : > { %v1456_v1 = vadd.f32 %v1455_v63, %v1454_v60  ;;  %v1519_v2 = vpop.f32.mrb[15].mxu1 }
 0x1c3   : > { %v903_v3 = vadd.f32 %v1517_v61, %v1453_v58  ;;  %v1520_v4 = vadd.f32 %v1519_v2, %v1518_v62 }
 0x1c5   : > { %v947_v6 = vadd.f32 %v903_v3, %v289_v0  ;;  %v906_v7 = vadd.f32 %v1520_v4, %v1456_v1 }
 0x1c6   : > { %v1457_v8 = vpop.f32.mrb[16].mxu0 }
 0x1c7   : > { %963 = vst [vmem:[#allocation2 + $0x30] sm:$0xff] %v947_v6  ;;  %v948_v9 = vadd.f32 %v906_v7, %v290_v5  ;;  %v1521_v10 = vpop.f32.mrb[16].mxu1  ;;  %v1458_v11 = vpop.f32.mrb[17].mxu0 }
 0x1c8   : > { %v1459_v12 = vadd.f32 %v1458_v11, %v1457_v8  ;;  %v1522_v13 = vpop.f32.mrb[17].mxu1  ;;  %v1460_v14 = vpop.f32.mrb[18].mxu0  ;;  %v297_v8 = vld [vmem:[#allocation2 + $0x70] sm:$0xff] }
 0x1c9   : > { %964 = vst [vmem:[#allocation2 + $0x38] sm:$0xff] %v948_v9  ;;  %v1523_v15 = vadd.f32 %v1522_v13, %v1521_v10  ;;  %v1524_v16 = vpop.f32.mrb[18].mxu1  ;;  %v1461_v17 = vpop.f32.mrb[19].mxu0  ;;  %v298_v13 = vld [vmem:[#allocation2 + $0x78] sm:$0xff] }
 0x1ca   : > { %v1462_v19 = vadd.f32 %v1461_v17, %v1460_v14  ;;  %v1525_v20 = vpop.f32.mrb[19].mxu1  ;;  %v977_v17 = vld [vmem:[#allocation2] sm:$0xff] (!%p1328_p12) }
 0x1cb   : > { %v911_v21 = vadd.f32 %v1523_v15, %v1459_v12  ;;  %v1526_v22 = vadd.f32 %v1525_v20, %v1524_v16 }
 0x1cd   : > { %v949_v24 = vadd.f32 %v911_v21, %v291_v18  ;;  %v914_v25 = vadd.f32 %v1526_v22, %v1462_v19  ;;  %v978_v18 = vld [vmem:[#allocation2 + $0x8] sm:$0xff] (!%p1328_p12)  ;;  %v1329_v19 = vld [vmem:[#allocation8] ss:$0 sm:$0xff] (!%p1328_p12)  ;;  %v979_v22 = vld [vmem:[#allocation2 + $0x10] sm:$0xff] (!%p1328_p12) }
 0x1ce   : > { %v1463_v26 = vpop.f32.mrb[20].mxu0  ;;  %v1000_v20 = vadd.f32 (!%p1328_p12), %v1329_v19, %v977_v17  ;;  %v1001_v21 = vadd.f32 (!%p1328_p12), %v1329_v19, %v978_v18 }
 0x1cf   : > { %965 = vst [vmem:[#allocation2 + $0x40] sm:$0xff] %v949_v24  ;;  %v950_v27 = vadd.f32 %v914_v25, %v292_v23  ;;  %v1527_v28 = vpop.f32.mrb[20].mxu1  ;;  %v1464_v29 = vpop.f32.mrb[21].mxu0  ;;  %v980_v23 = vld [vmem:[#allocation2 + $0x18] sm:$0xff] (!%p1328_p12)  ;;  %v981_v24 = vld [vmem:[#allocation2 + $0x20] sm:$0xff] (!%p1328_p12)  ;;  %v1002_v25 = vadd.f32 (!%p1328_p12), %v1329_v19, %v979_v22 }
 0x1d0   : > { %v1465_v30 = vadd.f32 %v1464_v29, %v1463_v26  ;;  %v1528_v31 = vpop.f32.mrb[21].mxu1  ;;  %v1466_v32 = vpop.f32.mrb[22].mxu0  ;;  %v1003_v26 = vadd.f32 (!%p1328_p12), %v1329_v19, %v980_v23  ;;  %v983_v29 = vld [vmem:[#allocation2 + $0x30] sm:$0xff] (!%p1328_p12) }
 0x1d1   : > { %966 = vst [vmem:[#allocation2 + $0x48] sm:$0xff] %v950_v27  ;;  %v1529_v33 = vadd.f32 %v1528_v31, %v1527_v28  ;;  %v1530_v34 = vpop.f32.mrb[22].mxu1  ;;  %v1467_v35 = vpop.f32.mrb[23].mxu0  ;;  %v982_v27 = vld [vmem:[#allocation2 + $0x28] sm:$0xff] (!%p1328_p12)  ;;  %v1004_v28 = vadd.f32 (!%p1328_p12), %v1329_v19, %v981_v24  ;;  %v1016_v31 = vmax.f32 (!%p1328_p12), %v1000_v20, 0.0 }
 0x1d2   : > { %v1468_v37 = vadd.f32 %v1467_v35, %v1466_v32  ;;  %v1531_v38 = vpop.f32.mrb[23].mxu1  ;;  %v1017_v32 = vmax.f32 (!%p1328_p12), %v1001_v21, 0.0 }
 0x1d3   : > { %v919_v39 = vadd.f32 %v1529_v33, %v1465_v30  ;;  %v1532_v40 = vadd.f32 %v1531_v38, %v1530_v34  ;;  %v984_v30 = vld [vmem:[#allocation2 + $0x38] sm:$0xff] (!%p1328_p12)  ;;  %v1005_v33 = vadd.f32 (!%p1328_p12), %v1329_v19, %v982_v27  ;;  %v1006_v34 = vadd.f32 (!%p1328_p12), %v1329_v19, %v983_v29 }
 0x1d4   : > { %v1018_v38 = vmax.f32 (!%p1328_p12), %v1002_v25, 0.0 }
 0x1d5   : > { %v951_v42 = vadd.f32 %v919_v39, %v293_v36  ;;  %v922_v43 = vadd.f32 %v1532_v40, %v1468_v37  ;;  %v1019_v39 = vmax.f32 (!%p1328_p12), %v1003_v26, 0.0  ;;  %v1020_v40 = vmax.f32 (!%p1328_p12), %v1004_v28, 0.0 }
 0x1d6   : > { %v1469_v44 = vpop.f32.mrb[24].mxu0  ;;  %v985_v35 = vld [vmem:[#allocation2 + $0x40] sm:$0xff] (!%p1328_p12) }
 0x1d7   : > { %967 = vst [vmem:[#allocation2 + $0x50] sm:$0xff] %v951_v42  ;;  %v952_v45 = vadd.f32 %v922_v43, %v294_v41  ;;  %v1533_v46 = vpop.f32.mrb[24].mxu1  ;;  %v1470_v47 = vpop.f32.mrb[25].mxu0  ;;  %v1007_v41 = vadd.f32 (!%p1328_p12), %v1329_v19, %v984_v30 }
 0x1d8   : > { %v1471_v48 = vadd.f32 %v1470_v47, %v1469_v44  ;;  %v1534_v49 = vpop.f32.mrb[25].mxu1  ;;  %v1472_v50 = vpop.f32.mrb[26].mxu0  ;;  %v986_v36 = vld [vmem:[#allocation2 + $0x48] sm:$0xff] (!%p1328_p12)  ;;  %v1373_v44 = vpack.c.bf16 (!%p1328_p12), %v1017_v32, %v1016_v31  ;;  %v1008_v47 = vadd.f32 (!%p1328_p12), %v1329_v19, %v985_v35 }
 0x1d9   : > { %968 = vst [vmem:[#allocation2 + $0x58] sm:$0xff] %v952_v45  ;;  %v1535_v51 = vadd.f32 %v1534_v49, %v1533_v46  ;;  %v1536_v52 = vpop.f32.mrb[26].mxu1  ;;  %v1473_v53 = vpop.f32.mrb[27].mxu0  ;;  %v1021_v45 = vmax.f32 (!%p1328_p12), %v1005_v33, 0.0  ;;  %v1022_v46 = vmax.f32 (!%p1328_p12), %v1006_v34, 0.0  ;;  %v1378_v49 = vpack.c.bf16 (!%p1328_p12), %v1019_v39, %v1018_v38 }
 0x1da   : > { %v1474_v55 = vadd.f32 %v1473_v53, %v1472_v50  ;;  %v1537_v56 = vpop.f32.mrb[27].mxu1  ;;  %v1023_v50 = vmax.f32 (!%p1328_p12), %v1007_v41, 0.0  ;;  %1374 = vst [vmem:[%s2336_s26] sm:$0xff] (!%p1328_p12), %v1373_v44  }
 0x1db   : > { %v927_v57 = vadd.f32 %v1535_v51, %v1471_v48  ;;  %v1538_v58 = vadd.f32 %v1537_v56, %v1536_v52  ;;  %v1009_v51 = vadd.f32 (!%p1328_p12), %v1329_v19, %v986_v36  ;;  %v1024_v56 = vmax.f32 (!%p1328_p12), %v1008_v47, 0.0  ;;  %1410 = vst [vmem:[%s2336_s26 + $0x8] sm:$0xff] (!%p1328_p12), %v1378_v49  }
 0x1dd   : > { %v953_v60 = vadd.f32 %v927_v57, %v295_v54  ;;  %v930_v61 = vadd.f32 %v1538_v58, %v1474_v55  ;;  %v1383_v55 = vpack.c.bf16 (!%p1328_p12), %v1021_v45, %v1020_v40 }
 0x1de   : > { %v1475_v62 = vpop.f32.mrb[28].mxu0  ;;  %v987_v37 = vld [vmem:[#allocation2 + $0x50] sm:$0xff] (!%p1328_p12) }
 0x1df   : > { %969 = vst [vmem:[#allocation2 + $0x60] sm:$0xff] %v953_v60  ;;  %v954_v63 = vadd.f32 %v930_v61, %v296_v59  ;;  %v1539_v0 = vpop.f32.mrb[28].mxu1  ;;  %v1476_v1 = vpop.f32.mrb[29].mxu0  ;;  %v1010_v52 = vadd.f32 (!%p1328_p12), %v1329_v19, %v987_v37  ;;  %v1388_v59 = vpack.c.bf16 (!%p1328_p12), %v1023_v50, %v1022_v46  ;;  %v1025_v60 = vmax.f32 (!%p1328_p12), %v1009_v51, 0.0  ;;  %1411 = vst [vmem:[%s2336_s26 + $0x10] sm:$0xff] (!%p1328_p12), %v1383_v55  }
 0x1e0   : > { %v1477_v2 = vadd.f32 %v1476_v1, %v1475_v62  ;;  %v1540_v3 = vpop.f32.mrb[29].mxu1  ;;  %v1478_v4 = vpop.f32.mrb[30].mxu0  ;;  %v988_v42 = vld [vmem:[#allocation2 + $0x58] sm:$0xff] (!%p1328_p12) }
 0x1e1   : > { %970 = vst [vmem:[#allocation2 + $0x68] sm:$0xff] %v954_v63  ;;  %v1541_v5 = vadd.f32 %v1540_v3, %v1539_v0  ;;  %v1542_v6 = vpop.f32.mrb[30].mxu1  ;;  %v1479_v7 = vpop.f32.mrb[31].mxu0  ;;  %v1011_v57 = vadd.f32 (!%p1328_p12), %v1329_v19, %v988_v42  ;;  %v1026_v61 = vmax.f32 (!%p1328_p12), %v1010_v52, 0.0  ;;  %1412 = vst [vmem:[%s2336_s26 + $0x18] sm:$0xff] (!%p1328_p12), %v1388_v59   ;;  %v1393_v3 = vpack.c.bf16 (!%p1328_p12), %v1025_v60, %v1024_v56 }
 0x1e2   : > { %v1480_v9 = vadd.f32 %v1479_v7, %v1478_v4  ;;  %v1543_v10 = vpop.f32.mrb[31].mxu1 }
 0x1e3   : > { %v935_v11 = vadd.f32 %v1541_v5, %v1477_v2  ;;  %v1544_v12 = vadd.f32 %v1543_v10, %v1542_v6  ;;  %976 = sbr.rel (%p1328_p12) target bundleno = 504 (0x1f8), region = 52  ;;  %v1027_v63 = vmax.f32 (!%p1328_p12), %v1011_v57, 0.0  ;;  %1413 = vst [vmem:[%s2336_s26 + $0x20] sm:$0xff] (!%p1328_p12), %v1393_v3  }
 0x1e5   : > { %v955_v14 = vadd.f32 %v935_v11, %v297_v8  ;;  %v938_v15 = vadd.f32 %v1544_v12, %v1480_v9  ;;  %v1398_v5 = vpack.c.bf16 (!%p1328_p12), %v1027_v63, %v1026_v61 }
 0x1e6   : > { %v989_v43 = vld [vmem:[#allocation2 + $0x60] sm:$0xff] (!%p1328_p12) }
 0x1e7   : > { %971 = vst [vmem:[#allocation2 + $0x70] sm:$0xff] %v955_v14  ;;  %v956_v16 = vadd.f32 %v938_v15, %v298_v13  ;;  %v1012_v58 = vadd.f32 (!%p1328_p12), %v1329_v19, %v989_v43  ;;  %1414 = vst [vmem:[%s2336_s26 + $0x28] sm:$0xff] (!%p1328_p12), %v1398_v5  }
 0x1e8   : > { %v990_v48 = vld [vmem:[#allocation2 + $0x68] sm:$0xff] (!%p1328_p12) }
 0x1e9   : > { %972 = vst [vmem:[#allocation2 + $0x78] sm:$0xff] %v956_v16  ;;  %v1013_v62 = vadd.f32 (!%p1328_p12), %v1329_v19, %v990_v48  ;;  %v1028_v0 = vmax.f32 (!%p1328_p12), %v1012_v58, 0.0 }
 0x1eb   : > { %v1029_v4 = vmax.f32 %v1013_v62, 0.0 }
 0x1ed   : > { %v1403_v8 = vpack.c.bf16 %v1029_v4, %v1028_v0 }
 0x1ee   : > { %v991_v53 = vld [vmem:[#allocation2 + $0x70] sm:$0xff] }
 0x1ef   : > { %v1014_v1 = vadd.f32 %v1329_v19, %v991_v53  ;;  %1415 = vst [vmem:[%s2336_s26 + $0x30] sm:$0xff] %v1403_v8  }
 0x1f0   : > { %v992_v54 = vld [vmem:[#allocation2 + $0x78] sm:$0xff] }
 0x1f1   : > { %v1015_v2 = vadd.f32 %v1329_v19, %v992_v54  ;;  %v1030_v6 = vmax.f32 %v1014_v1, 0.0 }
 0x1f3   : > { %v1031_v7 = vmax.f32 %v1015_v2, 0.0 }
 0x1f5   : > { %v1408_v9 = vpack.c.bf16 %v1031_v7, %v1030_v6 }
 0x1f7   : > { %1416 = vst [vmem:[%s2336_s26 + $0x38] sm:$0xff] %v1408_v9  }
 0x1f8 PF: > { %s2569_s11 = sld [smem:[#allocation18_spill]]  ;;  %s2571_s4 = sld [smem:[#allocation22_spill]] }
 0x1f9   : > { %s2572_s6 = sld [smem:[#allocation27_spill]]  ;;  %s1126_s28 = sshll.u32 %s2336_s26, 4  ;;  %s2419_s28 = int_to_ptr.vmem [resolvable:$true] %s1126_s28 }
 0x1fa   : > { %s2423_s0 = scalar_lea.sflag [#allocation5], %s255_s13  ;;  %s1863_s5 = scalar_lea.vmem %s2419_s28, 1024 }
 0x1fb   : > { %p1864_p0 = scmp.ne.s32.totalorder %s2419_s28, %s1863_s5  ;;  %s2028_s10 = smov [#allocation9]  }
 0x1fc   : > { %s1867_s9 = sshll.u32 %s2028_s10, 4  ;;  %s1868_s9 = int_to_ptr.vmem [resolvable:$false] %s1867_s9 }
 0x1fd   : > { %s1869_s8 = scalar_lea.vmem %s1868_s9, 2048  ;;  %p1870_p8 = scmp.lt.s32.totalorder %s2419_s28, %s1868_s9 }
 0x1fe   : > { %s1369_s27 = sshll.u32 %s2569_s11, 10  ;;  %p2573_p4 = scmp.ne.s32.totalorder %s2571_s4, 0 }
 0x1ff   : > { %s2416_s22 = scalar_lea.hbm %s2572_s6, %s1369_s27  ;;  %p1871_p6 = scmp.lt.s32.totalorder %s1869_s8, %s1863_s5 }
 0x200   : > { %p1865_p10 = pnand %p1864_p0, %p2573_p4 }
 0x201   : > { %p1872_p2 = por %p1871_p6, %p1870_p8 }
 0x202   : > { %p1866_p13 = pneg %p1865_p10 }
 0x204   : > { %p1873_p1 = pnand %p1872_p2, %p1866_p13 }
 0x206   : > { %1876 = shalt.err (!%p1873_p1)
}
 0x207   : > { %s1877_s13 = scalar_lea.hbm %s2416_s22, 1024  ;;  %s1881_s29 = scalar_lea.hbm %s2572_s6, 2048 }
 0x208   : > { %p1878_p9 = scmp.ne.s32.totalorder %s2416_s22, %s1877_s13  ;;  %p1882_p7 = scmp.lt.u32.totalorder %s2416_s22, %s2572_s6 }
 0x209   : > { %p1883_p11 = scmp.lt.u32.totalorder %s1881_s29, %s1877_s13  ;;  %p1885_p0 = scmp.lt.u32.totalorder %s1877_s13, %s2416_s22 }
 0x20a   : > { %p1879_p3 = pnand %p1878_p9, %p2573_p4 }
 0x20b   : > { %p1884_p12 = por %p1883_p11, %p1882_p7 }
 0x20c   : > { %p1880_p5 = pneg %p1879_p3 }
 0x20d   : > { %p1886_p10 = por %p1885_p0, %p1884_p12 }
 0x20f   : > { %p1887_p13 = pnand %p1886_p10, %p1880_p5 }
 0x211   : > { %1890 = shalt.err (!%p1887_p13)
}
 0x212   : > { %s2029_s15 = smov 64   ;;  %s2030_s27 = smov 4  }
 0x213   : > { %1553 = dma.vmem_to_hbm [thread:$0]  (%p2573_p4), %s2419_s28, 1024, %s2416_s22, %s2423_s0, %s2029_s15, %s2029_s15, %s2030_s27  }
 0x214 PF: > { %s2574_s12 = sld [smem:[#allocation14_spill]]  ;;  %s2575_s21 = sld [smem:[#allocation23_spill]] }
 0x215   : > { %p1573_p8 = scmp.ge.s32.totalorder %s2017_s25, 2 }
 0x21a   : > { %s1141_s5 = sand.u32 1, %s2574_s12   ;;  %p2576_p6 = scmp.ne.s32.totalorder %s2575_s21, 0 }
 0x21b   : > { %s1142_s10 = scalar_lea.sflag [#allocation5], %s1141_s5 }
 0x21c   : > { %p1567_p2 = pnand %p1573_p8, %p2576_p6 }
 0x21e   : > { %1960 = dma.done.wait (!%p1567_p2), %s1142_s10, 1024  }
 0x21f   : > { %1962 = vsyncadd (!%p1567_p2), %s1142_s10, 4294966272  ;;  %s22_s25 = sadd.s32 1, %s2017_s25   ;;  %s2578_s12 = sld [smem:[#allocation15_spill]] }
 0x220   : > { %p2452_p1 = scmp.ge.s32.totalorder %s22_s25, 6   ;;  %s2579_s15 = sld [smem:[#allocation16_spill]] }
 0x221   : > { %s2580_s4 = sld [smem:[#allocation24_spill]]  ;;  %s2581_s13 = smov %s1973_s14 }
 0x222   : > { %s2582_s14 = smov %s2230_s7  ;;  %s2583_s16 = smov %s1985_s17 }
 0x223   : > { %s2584_s17 = smov %s2223_s2  ;;  %s2585_s18 = smov %s1993_s19 }
 0x224   : > { %s2586_s19 = smov %s1997_s20  ;;  %s2587_s20 = smov %s2235_s30 }
 0x225   : > { %s2588_s21 = smov %s2009_s23  ;;  %s2589_s22 = smov %s2013_s24 }
 0x226   : > { %s2591_s24 = smov %s2597_s3  ;;  %21 = sbr.rel (!%p2452_p1) target bundleno = 16 (0x10), region = 102 }
 0x227   : > { %s2590_s23 = smov %s2580_s4 }
 0x22d   :  { %1147 = vsyncpa [#allocation4], 1 }
 0x22e   :  { %1149 = vsyncpa [#allocation4 + $0x1], 1 }
 0x22f   :  { %1150 = vsyncpa [#allocation7], 1 }
 0x230   :  { %1152 = vsyncpa [#allocation7 + $0x1], 1 }
 0x231   :  { %1153 = vsyncpa [#allocation5], 1 }
 0x232   :  { %1155 = vsyncpa [#allocation5 + $0x1], 1 }

</bundles_post_ra>
